<compile_context>
chip_gen: v7x
topology: tpu7x:2x2x1
jax: 0.10.0
libtpu: 0.0.40
codegen_flags: <defaults>
</compile_context>

<pallas_src>
import functools

import jax
import jax.numpy as jnp
from jax import lax
from jax.experimental import pallas as pl
from jax.experimental.pallas import tpu as pltpu


# ----------------------------- small helpers ---------------------------------

def _round_up(x, m):
    return ((x + m - 1) // m) * m


def _vmem_budget_bytes():
    """~80% of per-TensorCore VMEM (64 MiB fallback == v7x per-TC size)."""
    cap = 64 * 1024 * 1024
    try:
        info = pltpu.get_tpu_info()
        for name in ("vmem_capacity_bytes", "vmem_size_bytes", "vmem_bytes"):
            v = getattr(info, name, None)
            if v:
                cap = int(v)
                break
    except Exception:
        pass
    return int(cap * 0.8)


def _choose_lane_tile(s, k_chunks, c_in, channels, budget_bytes, lane_cap=None):
    """Largest 128-aligned lane tile of the query/point axis fitting the budget."""
    c_last = channels[-1]
    # bytes per output lane column (double-buffering counted once):
    per_col = (2 * (2 * c_in * k_chunks)      # bf16 input block, double-buffered
               + 2 * (4 * c_last)             # f32 output block, double-buffered
               + 6 * k_chunks * sum(channels)  # in-kernel f32+bf16 intermediates
               + 4 * c_last)                  # running-max tile
    tile = (budget_bytes // max(per_col, 1)) // 128 * 128
    cap = 2048 if c_last <= 64 else 1024
    if lane_cap is not None:
        cap = min(cap, max(128, (lane_cap // 128) * 128))
    tile = max(128, min(tile, cap, _round_up(s, 128)))
    return tile


# ----------------------------- Pallas kernel ---------------------------------

def _mlp_max_kernel(num_layers, k_chunks, accumulate, x_ref, *refs):
    """Fused (1x1 conv + folded bias/BN + ReLU) MLP stack + max reduction.

    x_ref  : (Cin, k_chunks*tile) bf16 -- channels on sublanes; the lane axis
             holds k_chunks contiguous chunks of `tile` query columns each.
    refs   : [w1, b1, ..., wL, bL, out_ref]; w bf16 (Cout,Cin), b f32 (Cout,1).
    out_ref: (Cout, tile) f32, or (Cout, 1) f32 when accumulate=True
             (group_all: lane-reduce + running max across the grid axis 1).
    """
    out_ref = refs[-1]
    params = refs[:-1]
    # hoisted once per grid step (not per neighbor)
    ws = [params[2 * l][...] for l in range(num_layers)]
    bs = [params[2 * l + 1][...] for l in range(num_layers)]

    h = x_ref[...]                                      # (Cin, width) bf16
    for l in range(num_layers):
        a = jnp.dot(ws[l], h, preferred_element_type=jnp.float32)  # one MXU matmul/layer
        a = jnp.maximum(a + bs[l], 0.0)                 # folded bias/BN + ReLU in f32
        h = a if l == num_layers - 1 else a.astype(jnp.bfloat16)

    width = h.shape[-1]
    tile = width // k_chunks
    m = h[:, :tile]
    for kk in range(1, k_chunks):                       # max over neighbors:
        m = jnp.maximum(m, h[:, kk * tile:(kk + 1) * tile])  # 128-aligned static slices

    if accumulate:                                      # group_all path
        m = jnp.max(m, axis=-1, keepdims=True)          # lane reduce (XLU)

        @pl.when(pl.program_id(1) == 0)
        def _init():
            out_ref[...] = m

        @pl.when(pl.program_id(1) > 0)
        def _update():
            out_ref[...] = jnp.maximum(out_ref[...], m)
    else:
        out_ref[...] = m


def _run_mlp_max(x, folded, *, k_chunks, tile, accumulate, vmem_limit):
    """x: (B, Cin, n_tiles*k_chunks*tile) bf16.
    Returns (B, Cout, n_tiles*tile) f32, or (B, Cout, 1) f32 if accumulate."""
    b, c_in, total = x.shape
    width = k_chunks * tile
    n_tiles = total // width
    c_out = folded[-1][0].shape[0]
    num_layers = len(folded)

    in_specs = [pl.BlockSpec((None, c_in, width), lambda bi, ti: (bi, 0, ti))]
    flat = []
    for (w, bias) in folded:
        flat += [w, bias]
        in_specs += [pl.BlockSpec(w.shape, lambda bi, ti: (0, 0)),
                     pl.BlockSpec(bias.shape, lambda bi, ti: (0, 0))]

    if accumulate:
        out_shape = jax.ShapeDtypeStruct((b, c_out, 1), jnp.float32)
        out_specs = pl.BlockSpec((None, c_out, 1), lambda bi, ti: (bi, 0, 0))
        semantics = ("parallel", "arbitrary")
    else:
        out_shape = jax.ShapeDtypeStruct((b, c_out, n_tiles * tile), jnp.float32)
        out_specs = pl.BlockSpec((None, c_out, tile), lambda bi, ti: (bi, 0, ti))
        semantics = ("parallel", "parallel")

    kernel = functools.partial(_mlp_max_kernel, num_layers, k_chunks, accumulate)
    return pl.pallas_call(
        kernel,
        out_shape=out_shape,
        grid=(b, n_tiles),
        in_specs=in_specs,
        out_specs=out_specs,
        compiler_params=pltpu.CompilerParams(
            dimension_semantics=semantics,
            vmem_limit_bytes=int(vmem_limit)),
    )(x, *flat)


# ------------------------------- JAX glue ------------------------------------

def farthest_point_sampling(coords, num_samples):
    """coords: (B, 3, N) -> idx (B, num_samples) int32. Deterministic start at 0."""
    b, _, n = coords.shape
    xyz = jnp.transpose(coords, (0, 2, 1))                     # (B, N, 3)

    def body(i, state):
        dists, farthest, idxs = state
        idxs = idxs.at[:, i].set(farthest)
        centroid = jax.vmap(lambda p, f: p[f])(xyz, farthest)  # (B, 3)
        d = jnp.sum((xyz - centroid[:, None, :]) ** 2, axis=-1)
        dists = jnp.minimum(dists, d)
        farthest = jnp.argmax(dists, axis=-1).astype(jnp.int32)
        return dists, farthest, idxs

    dists = jnp.full((b, n), 1e10, jnp.float32)
    farthest = jnp.zeros((b,), jnp.int32)
    idxs = jnp.zeros((b, num_samples), jnp.int32)
    _, _, idxs = lax.fori_loop(0, num_samples, body, (dists, farthest, idxs))
    return idxs


def radius_and_k_nearest_neighbors(center_coords, coords, k, radius):
    """center: (B,3,S), coords: (B,3,N) -> (idx (B,S,k), sqdist (B,S,k))."""
    # TODO(synk): for production sizes tile this kNN (the (B,S,N) distance
    # matrix is a large HBM round trip) or move it into a Pallas kernel.
    c = jnp.transpose(center_coords, (0, 2, 1))                # (B, S, 3)
    p = jnp.transpose(coords, (0, 2, 1))                       # (B, N, 3)
    d2 = jnp.sum((c[:, :, None, :] - p[:, None, :, :]) ** 2, axis=-1)
    neg_d, idx = lax.top_k(-d2, k)                             # ascending distance
    dists = -neg_d
    mask = dists > radius ** 2                                 # outside ball -> nearest
    idx = jnp.where(mask, idx[:, :, 0:1], idx)
    dists = jnp.where(mask, dists[:, :, 0:1], dists)
    return idx.astype(jnp.int32), dists


# --------------------------- params (Conv1x1 + BN eval) ----------------------

def init_params(key, in_channel, mlp_channels):
    """Conv2d 1x1 (xavier_uniform weight, default-uniform bias) + BatchNorm2d in
    eval mode with fresh stats (gamma=1, beta=0, mean=0, var=1, eps=1e-5)."""
    eps = 1e-5
    params = []
    c_in = in_channel
    for c_out in mlp_channels:
        key, kw, kb = jax.random.split(key, 3)
        bound = (6.0 / (c_in + c_out)) ** 0.5
        w = jax.random.uniform(kw, (c_out, c_in), jnp.float32, -bound, bound)
        bbound = 1.0 / (c_in ** 0.5)
        bias = jax.random.uniform(kb, (c_out, 1), jnp.float32, -bbound, bbound)
        bn_scale = jnp.full((c_out, 1), 1.0 / (1.0 + eps) ** 0.5, jnp.float32)
        bn_shift = jnp.zeros((c_out, 1), jnp.float32)
        params.append((w, bias, bn_scale, bn_shift))
        c_in = c_out
    return params


def fold_params(params):
    """Fold conv bias + BN affine into (W', b'); W' in bf16 for the MXU, b' f32."""
    folded = []
    for (w, bias, bn_scale, bn_shift) in params:
        w_f = (w * bn_scale).astype(jnp.bfloat16)
        b_f = (bias * bn_scale + bn_shift).astype(jnp.float32)
        folded.append((w_f, b_f))
    return folded


# --------------------------- module-level forward ----------------------------

def pointnet_set_abstraction(coords, features, params, num_fps_points, radius,
                             num_bq_points, group_all, lane_tile_cap=None):
    """coords: (B,3,N), features: (B,C,N) or None.
    Returns (new_coords (B,3,S') or None, new_features (B, mlp[-1], S' or 1))."""
    folded = fold_params(params)
    channels = [w.shape[0] for (w, _) in folded]
    budget = _vmem_budget_bytes()
    b = coords.shape[0]

    if group_all:
        x_all = coords if features is None else jnp.concatenate(
            [coords, features], axis=1)                                  # (B, Cin, N)
        c_in = x_all.shape[1]
        n = x_all.shape[2]
        split = False
        if b == 1 and n >= 256:      # keep both v7x TensorCores busy for B==1
            half = (n + 1) // 2
            x_all = jnp.pad(x_all, ((0, 0), (0, 0), (0, 2 * half - n)), mode="edge")
            x_all = jnp.concatenate([x_all[:, :, :half], x_all[:, :, half:]], axis=0)
            n = half
            split = True
        tile = _choose_lane_tile(n, 1, c_in, channels, budget, lane_tile_cap)
        n_pad = _round_up(n, tile)
        # replicate-pad so padded columns never change the max
        x_all = jnp.pad(x_all, ((0, 0), (0, 0), (0, n_pad - n)), mode="edge")
        x_all = x_all.astype(jnp.bfloat16)
        out = _run_mlp_max(x_all, folded, k_chunks=1, tile=tile,
                           accumulate=True, vmem_limit=budget)           # (B_eff,Cout,1)
        if split:
            out = jnp.max(out, axis=0, keepdims=True)
        return None, out

    # --- sampling + grouping (plain-JAX glue) ---
    s = num_fps_points
    k = num_bq_points
    fps_idx = farthest_point_sampling(coords, s)                         # (B, S)
    xyz = jnp.transpose(coords, (0, 2, 1))                               # (B, N, 3)
    centers = jax.vmap(lambda p, i: p[i])(xyz, fps_idx)                  # (B, S, 3)
    new_coords = jnp.transpose(centers, (0, 2, 1))                       # (B, 3, S)
    idx, _ = radius_and_k_nearest_neighbors(new_coords, coords, k, radius)  # (B,S,K)

    c_in = 3 + (0 if features is None else features.shape[1])
    tile = _choose_lane_tile(s, k, c_in, channels, budget, lane_tile_cap)
    s_pad = _round_up(s, tile)
    n_tiles = s_pad // tile
    if b == 1 and n_tiles < 2 and tile > 128:   # dual-TC: force >=2 parallel steps
        tile = max(128, (tile // 2) // 128 * 128)
        s_pad = _round_up(s, tile)
        n_tiles = s_pad // tile

    # Column layout for the kernel: (s_tile, k, s_in_tile) -- every S-tile block
    # is one lane-dense (Cin, K*tile) slab and the in-kernel neighbor max uses
    # 128-aligned static slices.
    idx_p = jnp.pad(idx, ((0, 0), (0, s_pad - s), (0, 0)))               # pad with idx 0
    flat_idx = jnp.transpose(idx_p.reshape(b, n_tiles, tile, k),
                             (0, 1, 3, 2)).reshape(b, n_tiles * k * tile)

    centers_p = jnp.pad(new_coords, ((0, 0), (0, 0), (0, s_pad - s)))    # (B, 3, S_pad)
    center_rep = jnp.broadcast_to(
        centers_p.reshape(b, 3, n_tiles, 1, tile),
        (b, 3, n_tiles, k, tile)).reshape(b, 3, n_tiles * k * tile)

    # Neighbor gather directly in the kernel layout (single XLA gather, bf16 write).
    # TODO(synk): fuse this gather into the kernel (scalar-prefetch idx + per-tile
    # DMA from an HBM-resident point array) so the K-expanded tensor never hits HBM.
    take_cols = jax.vmap(lambda p, i: p[:, i])
    g_xyz = take_cols(coords, flat_idx) - center_rep                     # (B, 3, L) f32
    if features is not None:
        g = jnp.concatenate([g_xyz, take_cols(features, flat_idx)], axis=1)
    else:
        g = g_xyz
    g = g.astype(jnp.bfloat16)                                           # (B, Cin, L)

    out = _run_mlp_max(g, folded, k_chunks=k, tile=tile,
                       accumulate=False, vmem_limit=budget)              # (B,Cout,S_pad)
    return new_coords, out[:, :, :s]


# --------------------------- plain-JAX reference ------------------------------

def _ref_mlp_max(x_last_c, folded):
    """x_last_c: (B, Q, R, Cin); MLP over channels, then max over axis 2 (R)."""
    h = x_last_c.astype(jnp.bfloat16).astype(jnp.float32)
    for i, (w, bias) in enumerate(folded):
        h = jnp.einsum("oc,bqrc->bqro", w.astype(jnp.float32), h) + bias[:, 0]
        h = jnp.maximum(h, 0.0)
        if i < len(folded) - 1:
            h = h.astype(jnp.bfloat16).astype(jnp.float32)
    return jnp.max(h, axis=2)                                            # (B, Q, Cout)


def reference_set_abstraction(coords, features, params, num_fps_points, radius,
                              num_bq_points, group_all):
    folded = fold_params(params)
    if group_all:
        x = coords if features is None else jnp.concatenate([coords, features], axis=1)
        x = jnp.transpose(x, (0, 2, 1))[:, None, :, :]                   # (B,1,N,Cin)
        out = _ref_mlp_max(x, folded)                                    # (B,1,Cout)
        return None, jnp.transpose(out, (0, 2, 1))
    fps_idx = farthest_point_sampling(coords, num_fps_points)
    xyz = jnp.transpose(coords, (0, 2, 1))
    centers = jax.vmap(lambda p, i: p[i])(xyz, fps_idx)
    new_coords = jnp.transpose(centers, (0, 2, 1))
    idx, _ = radius_and_k_nearest_neighbors(new_coords, coords, num_bq_points, radius)
    gather_rows = jax.vmap(lambda p, i: p[i])
    g_xyz = gather_rows(xyz, idx) - centers[:, :, None, :]               # (B,S,K,3)
    if features is not None:
        feats_nc = jnp.transpose(features, (0, 2, 1))
        g = jnp.concatenate([g_xyz, gather_rows(feats_nc, idx)], axis=-1)
    else:
        g = g_xyz
    out = _ref_mlp_max(g, folded)                                        # (B,S,Cout)
    return new_coords, jnp.transpose(out, (0, 2, 1))


# ---------------------------------- main --------------------------------------

if __name__ == "__main__":
    key = jax.random.PRNGKey(0)
    keys = jax.random.split(key, 8)

    B, N, C_feat = 2, 64, 4
    num_fps, radius, num_bq = 16, 0.4, 8
    mlp_channels = [16, 32]

    coords = jax.random.uniform(keys[0], (B, 3, N), jnp.float32, -1.0, 1.0)
    features = jax.random.normal(keys[1], (B, C_feat, N), jnp.float32)
    params = init_params(keys[2], 3 + C_feat, mlp_channels)

    def check(got, want, tol=5e-2):
        got = jnp.asarray(got)
        want = jnp.asarray(want)
        assert got.shape == want.shape, (got.shape, want.shape)
        assert bool(jnp.all(jnp.isfinite(got)))
        assert float(jnp.max(jnp.abs(got - want))) < tol

    # 1) FPS sampling + ball-query grouping + fused MLP/max kernel
    nc, nf = pointnet_set_abstraction(
        coords, features, params, num_fps, radius, num_bq, group_all=False)
    jax.block_until_ready(nf)
    _, rf = reference_set_abstraction(
        coords, features, params, num_fps, radius, num_bq, group_all=False)
    assert nc.shape == (B, 3, num_fps)
    assert nf.shape == (B, mlp_channels[-1], num_fps)
    check(nf, rf)

    # 2) group_all (classification head) path
    nc_all, nf_all = pointnet_set_abstraction(
        coords, features, params, num_fps, radius, num_bq, group_all=True)
    jax.block_until_ready(nf_all)
    _, rf_all = reference_set_abstraction(
        coords, features, params, num_fps, radius, num_bq, group_all=True)
    assert nc_all is None
    assert nf_all.shape == (B, mlp_channels[-1], 1)
    check(nf_all, rf_all)

    # 3) group_all with B=1 and N not a multiple of 128: exercises the dual-TC
    #    batch split, edge padding and the cross-tile running-max accumulation.
    c1 = jax.random.uniform(keys[3], (1, 3, 4500), jnp.float32, -1.0, 1.0)
    f1 = jax.random.normal(keys[4], (1, C_feat, 4500), jnp.float32)
    _, nf1 = pointnet_set_abstraction(
        c1, f1, params, num_fps, radius, num_bq, group_all=True)
    jax.block_until_ready(nf1)
    _, rf1 = reference_set_abstraction(
        c1, f1, params, num_fps, radius, num_bq, group_all=True)
    check(nf1, rf1)

    # 4) multi-S-tile grouped path (forced small lane tile): exercises padded
    #    query columns and the (s_tile, k, s_in_tile) column layout across tiles.
    c2 = jax.random.uniform(keys[5], (2, 3, 256), jnp.float32, -1.0, 1.0)
    f2 = jax.random.normal(keys[6], (2, C_feat, 256), jnp.float32)
    nc2, nf2 = pointnet_set_abstraction(
        c2, f2, params, 160, radius, num_bq, group_all=False, lane_tile_cap=128)
    jax.block_until_ready(nf2)
    _, rf2 = reference_set_abstraction(
        c2, f2, params, 160, radius, num_bq, group_all=False)
    assert nc2.shape == (2, 3, 160)
    check(nf2, rf2)

    print("KERNEL_OK")
</pallas_src>

<mosaic_0001>
module attributes {stable_mosaic.version = 11 : i64} {
  func.func @_mlp_max_kernel(%arg0: i32, %arg1: i32, %arg2: memref<1x7x1024xbf16, #tpu.memory_space<vmem>>, %arg3: memref<16x7xbf16, #tpu.memory_space<vmem>>, %arg4: memref<16x1xf32, #tpu.memory_space<vmem>>, %arg5: memref<32x16xbf16, #tpu.memory_space<vmem>>, %arg6: memref<32x1xf32, #tpu.memory_space<vmem>>, %arg7: memref<1x32x128xf32, #tpu.memory_space<vmem>>) attributes {dimension_semantics = [#tpu.dimension_semantics<parallel>, #tpu.dimension_semantics<parallel>], iteration_bounds = array<i64: 2, 1>, scalar_prefetch = 0 : i64, scratch_operands = 0 : i64, tpu.core_type = #tpu.core_type<tc>, window_params = [{transform_indices = @transform_0, window_bounds = array<i64: 1, 7, 1024>}, {pipeline_mode = #tpu.pipeline_mode<synchronous>, transform_indices = @transform_1, window_bounds = array<i64: 16, 7>}, {pipeline_mode = #tpu.pipeline_mode<synchronous>, transform_indices = @transform_2, window_bounds = array<i64: 16, 1>}, {pipeline_mode = #tpu.pipeline_mode<synchronous>, transform_indices = @transform_3, window_bounds = array<i64: 32, 16>}, {pipeline_mode = #tpu.pipeline_mode<synchronous>, transform_indices = @transform_4, window_bounds = array<i64: 32, 1>}, {transform_indices = @transform_5, window_bounds = array<i64: 1, 32, 128>}]} {
    %c0 = arith.constant 0 : index
    %c0_0 = arith.constant 0 : index
    %0 = vector.load %arg3[%c0, %c0_0] : memref<16x7xbf16, #tpu.memory_space<vmem>>, vector<16x7xbf16>
    %c0_1 = arith.constant 0 : index
    %c0_2 = arith.constant 0 : index
    %1 = vector.load %arg5[%c0_1, %c0_2] : memref<32x16xbf16, #tpu.memory_space<vmem>>, vector<32x16xbf16>
    %c0_3 = arith.constant 0 : index
    %c0_4 = arith.constant 0 : index
    %2 = vector.load %arg4[%c0_3, %c0_4] : memref<16x1xf32, #tpu.memory_space<vmem>>, vector<16x1xf32>
    %c0_5 = arith.constant 0 : index
    %c0_6 = arith.constant 0 : index
    %3 = vector.load %arg6[%c0_5, %c0_6] : memref<32x1xf32, #tpu.memory_space<vmem>>, vector<32x1xf32>
    %c0_7 = arith.constant 0 : index
    %c0_8 = arith.constant 0 : index
    %c0_9 = arith.constant 0 : index
    %4 = vector.load %arg2[%c0_7, %c0_8, %c0_9] : memref<1x7x1024xbf16, #tpu.memory_space<vmem>>, vector<1x7x1024xbf16>
    %5 = vector.shape_cast %4 : vector<1x7x1024xbf16> to vector<7x1024xbf16>
    %cst = arith.constant dense<0.000000e+00> : vector<16x1024xf32>
    %6 = tpu.matmul %0, %5, %cst {dimension_numbers = #tpu.dot_dimension_numbers<[1], [0], [0], [1], [0, 0, 1, 1], [], []>} : vector<16x7xbf16>, vector<7x1024xbf16>, vector<16x1024xf32> -> vector<16x1024xf32>
    %7 = vector.broadcast %2 : vector<16x1xf32> to vector<16x1024xf32>
    %8 = arith.addf %6, %7 : vector<16x1024xf32>
    %cst_10 = arith.constant 0.000000e+00 : f32
    %9 = vector.broadcast %cst_10 : f32 to vector<16x1024xf32>
    %10 = arith.maximumf %8, %9 : vector<16x1024xf32>
    %11 = arith.truncf %10 : vector<16x1024xf32> to vector<16x1024xbf16>
    %cst_11 = arith.constant dense<0.000000e+00> : vector<32x1024xf32>
    %12 = tpu.matmul %1, %11, %cst_11 {dimension_numbers = #tpu.dot_dimension_numbers<[1], [0], [0], [1], [0, 0, 1, 1], [], []>} : vector<32x16xbf16>, vector<16x1024xbf16>, vector<32x1024xf32> -> vector<32x1024xf32>
    %13 = vector.broadcast %3 : vector<32x1xf32> to vector<32x1024xf32>
    %14 = arith.addf %12, %13 : vector<32x1024xf32>
    %cst_12 = arith.constant 0.000000e+00 : f32
    %15 = vector.broadcast %cst_12 : f32 to vector<32x1024xf32>
    %16 = arith.maximumf %14, %15 : vector<32x1024xf32>
    %17 = vector.extract_strided_slice %16 {offsets = [0, 0], sizes = [32, 128], strides = [1, 1]} : vector<32x1024xf32> to vector<32x128xf32>
    %18 = vector.extract_strided_slice %16 {offsets = [0, 128], sizes = [32, 128], strides = [1, 1]} : vector<32x1024xf32> to vector<32x128xf32>
    %19 = arith.maximumf %17, %18 : vector<32x128xf32>
    %20 = vector.extract_strided_slice %16 {offsets = [0, 256], sizes = [32, 128], strides = [1, 1]} : vector<32x1024xf32> to vector<32x128xf32>
    %21 = arith.maximumf %19, %20 : vector<32x128xf32>
    %22 = vector.extract_strided_slice %16 {offsets = [0, 384], sizes = [32, 128], strides = [1, 1]} : vector<32x1024xf32> to vector<32x128xf32>
    %23 = arith.maximumf %21, %22 : vector<32x128xf32>
    %24 = vector.extract_strided_slice %16 {offsets = [0, 512], sizes = [32, 128], strides = [1, 1]} : vector<32x1024xf32> to vector<32x128xf32>
    %25 = arith.maximumf %23, %24 : vector<32x128xf32>
    %26 = vector.extract_strided_slice %16 {offsets = [0, 640], sizes = [32, 128], strides = [1, 1]} : vector<32x1024xf32> to vector<32x128xf32>
    %27 = arith.maximumf %25, %26 : vector<32x128xf32>
    %28 = vector.extract_strided_slice %16 {offsets = [0, 768], sizes = [32, 128], strides = [1, 1]} : vector<32x1024xf32> to vector<32x128xf32>
    %29 = arith.maximumf %27, %28 : vector<32x128xf32>
    %30 = vector.extract_strided_slice %16 {offsets = [0, 896], sizes = [32, 128], strides = [1, 1]} : vector<32x1024xf32> to vector<32x128xf32>
    %31 = arith.maximumf %29, %30 : vector<32x128xf32>
    %c0_13 = arith.constant 0 : index
    %c0_14 = arith.constant 0 : index
    %c0_15 = arith.constant 0 : index
    %32 = vector.load %arg7[%c0_13, %c0_14, %c0_15] : memref<1x32x128xf32, #tpu.memory_space<vmem>>, vector<1x32x128xf32>
    %33 = vector.shape_cast %32 : vector<1x32x128xf32> to vector<32x128xf32>
    %34 = vector.shape_cast %31 : vector<32x128xf32> to vector<1x32x128xf32>
    tpu.vector_store %arg7[%c0_13, %c0_14, %c0_15], %34 {strides = array<i32>} : memref<1x32x128xf32, #tpu.memory_space<vmem>>, vector<1x32x128xf32>,
    return
  }
  func.func @transform_0(%arg0: i32, %arg1: i32) -> (i32, i32, i32) {
    %c0_i32 = arith.constant 0 : i32
    %c0_i32_0 = arith.constant 0 : i32
    return %arg0, %c0_i32, %arg1 : i32, i32, i32
  }
  func.func @transform_1(%arg0: i32, %arg1: i32) -> (i32, i32) {
    %c0_i32 = arith.constant 0 : i32
    %c0_i32_0 = arith.constant 0 : i32
    %c0_i32_1 = arith.constant 0 : i32
    return %c0_i32, %c0_i32_0 : i32, i32
  }
  func.func @transform_2(%arg0: i32, %arg1: i32) -> (i32, i32) {
    %c0_i32 = arith.constant 0 : i32
    %c0_i32_0 = arith.constant 0 : i32
    %c0_i32_1 = arith.constant 0 : i32
    return %c0_i32, %c0_i32_0 : i32, i32
  }
  func.func @transform_3(%arg0: i32, %arg1: i32) -> (i32, i32) {
    %c0_i32 = arith.constant 0 : i32
    %c0_i32_0 = arith.constant 0 : i32
    %c0_i32_1 = arith.constant 0 : i32
    return %c0_i32, %c0_i32_0 : i32, i32
  }
  func.func @transform_4(%arg0: i32, %arg1: i32) -> (i32, i32) {
    %c0_i32 = arith.constant 0 : i32
    %c0_i32_0 = arith.constant 0 : i32
    %c0_i32_1 = arith.constant 0 : i32
    return %c0_i32, %c0_i32_0 : i32, i32
  }
  func.func @transform_5(%arg0: i32, %arg1: i32) -> (i32, i32, i32) {
    %c0_i32 = arith.constant 0 : i32
    %c0_i32_0 = arith.constant 0 : i32
    return %arg0, %c0_i32, %arg1 : i32, i32, i32
  }
}

</mosaic_0001>

<bundles_post_ra>
// kernel: tpu_custom_call.1
= control target key start
LH: loop header
LB: loop body
LE: loop exit
PB: predicated region body
PF: predicated region fallthrough
CT: control target
= control target key end

     0   :  { %10 = vsyncpa [#allocation3], 0  ;;  %s1372_s0 = inlined_call_operand.vmem [shape: bf16[2,7,1024], index: 0, kind: input, shape index: {}]   ;;  %s1373_s1 = inlined_call_operand.vmem [shape: bf16[16,7], index: 1, kind: input, shape index: {}]   ;;  %s1374_s2 = inlined_call_operand.vmem [shape: f32[16,1], index: 2, kind: input, shape index: {}]   ;;  %s1375_s3 = inlined_call_operand.vmem [shape: bf16[32,16], index: 3, kind: input, shape index: {}]   ;;  %s1376_s4 = inlined_call_operand.vmem [shape: f32[32,1], index: 4, kind: input, shape index: {}]   ;;  %s1377_s5 = inlined_call_operand.hbm [shape: f32[2,32,128], index: 5, kind: output, shape index: {}]  }
   0x1   :  { %12 = vsyncpa [#allocation3 + $0x1], 0  ;;  %s1164_s18 = smov 0   ;;  %s1166_s19 = smov 0  }
   0x2   :  { %s1168_s20 = smov 0   ;;  %s1170_s21 = smov 0  }
   0x3   :  { %s1172_s22 = smov 0   ;;  %s1174_s23 = smov 0  }
   0x4 LB: > { %s939_s24 = sadd.s32 4294967295, %s1127_s23   ;;  %s940_s25 = sadd.s32 4294967294, %s1127_s23   ;;  %s1127_s23 = sphi %s1174_s23, %s18_s23   ;;  %s1123_s22 = sphi %s1172_s22, %s1384_s22   ;;  %s1119_s21 = sphi %s1170_s21, %s1383_s21   ;;  %s1115_s20 = sphi %s1168_s20, %s1382_s20   ;;  %s1111_s19 = sphi %s1166_s19, %s1381_s19   ;;  %s1107_s18 = sphi %s1164_s18, %s1380_s18  }
   0x5   : > { %s30_s26 = sadd.s32 1, %s1123_s22  ;;  %s151_s27 = sadd.s32 1, %s1115_s20 }
   0x6   : > { %p32_p0 = scmp.ge.s32.totalorder %s30_s26, 2  ;;  %p161_p1 = scmp.ne.s32.totalorder %s1115_s20, %s1111_s19 }
   0x7   : > { %p162_p2 = scmp.eq.s32.totalorder %s939_s24, 1  ;;  %p167_p3 = scmp.ne.s32.totalorder %s1111_s19, %s1107_s18 }
   0x8   : > { %s1386_s26 = smov (%p32_p0, %s30_s26), 0  ;;  %p168_p5 = scmp.eq.s32.totalorder %s940_s25, 1 }
   0x9   : > { %p1204_p4 = por %p162_p2, %p161_p1  ;;  %s146_s29 = ssub.s32 %s1123_s22, %s1386_s26 }
   0xa   : > { %p943_p6 = scmp.ge.s32.totalorder %s1127_s23, 1  ;;  %p149_p7 = scmp.eq.s32.totalorder %s146_s29, 0 }
   0xb   : > { %p1211_p8 = por %p168_p5, %p167_p3  ;;  %p211_p9 = scmp.lt.s32.totalorder %s1127_s23, 3 }
   0xc   : > { %s1217_s6 = scalar_select %p149_p7, %s1115_s20, %s151_s27  }
   0xd   : > { %p212_p10 = pnand %p943_p6, %p211_p9 }
   0xe   : > { %p244_p11 = scmp.lt.s32.totalorder (!%p212_p10), %s1119_s21, 1  ;;  %vm309_vm0 = vcmask (!%p212_p10), 1042432   ;;  %v1129_v0 = vmov (!%p212_p10), 0   ;;  %vm310_vm1 = vcmask (!%p212_p10), 1043456   ;;  %v1130_v1 = vmov (!%p212_p10), 65535   ;;  %v260_v3 = vld [vmem:[%s1374_s2] sm:$0xff] (!%p212_p10) }
   0xf   : > { %215 = sbr.rel (%p212_p10) target bundleno = 525 (0x20d), region = 40  ;;  %369 = vmatprep.mubr.bf16.mxu0 (!%p212_p10), %v1129_v0  ;;  %412 = vmatprep.mubr.bf16.mxu1 (!%p212_p10), %v1129_v0  ;;  %v311_v2 = vsel (!%p212_p10), %vm309_vm0, 4294967295, %v1130_v1  ;;  %v261_v4 = vld [vmem:[%s1374_s2 + $0x8] sm:$0xff] (!%p212_p10)  ;;  %v1042_v24 = vld [vmem:[%s1373_s1] sm:$0xff] (!%p212_p10)   ;;  %v264_v25 = vld [vmem:[%s1376_s4 + $0x10] sm:$0xff] (!%p212_p10)  ;;  %vm305_vm2 = vcmask (!%p212_p10), 56320  }
  0x10   : > { %1036 = vset.pattern.permute.xlu0 (!%p212_p10), %v1129_v0  ;;  %1037 = vset.pattern.permute.xlu1 (!%p212_p10), %v1129_v0  ;;  %v312_v6 = vsel (!%p212_p10), %vm310_vm1, %v311_v2, 0  ;;  %v262_v28 = vld [vmem:[%s1376_s4] sm:$0xff] (!%p212_p10)  ;;  %v263_v29 = vld [vmem:[%s1376_s4 + $0x8] sm:$0xff] (!%p212_p10)  ;;  %v265_v30 = vld [vmem:[%s1376_s4 + $0x18] sm:$0xff] (!%p212_p10)  ;;  %vm563_vm3 = vcmask (!%p212_p10), 130048   ;;  %s976_s25 = sshll.u32 (!%p212_p10), %s1119_s21, 9 }
  0x11   : > { %272 = vperm.xlu0 (!%p212_p10), %1036, %v260_v3   ;;  %535 = vperm.xlu1 (!%p212_p10), %1037, %v262_v28   ;;  %s1131_s9 = smov (!%p212_p10), [#allocation2]  }
  0x15   : > { %277 = vperm.xlu0 (!%p212_p10), %1036, %v261_v4   ;;  %540 = vperm.xlu1 (!%p212_p10), %1037, %v263_v29  }
  0x16   : > { %s245_s7 = scalar_select %p244_p11, %s1119_s21, 1 }
  0x18   : > { %s975_s10 = sshll.u32 %s245_s7, 5  ;;  %s1322_s7 = scalar_lea.hbm %s1377_s5, %s976_s25 }
  0x19   : > { %s251_s15 = scalar_lea.vmem %s1372_s0, %s975_s10  ;;  %545 = vperm.xlu0 %1036, %v264_v25   ;;  %550 = vperm.xlu1 %1037, %v265_v30   ;;  %s1053_s10 = sshll.u32 %s1131_s9, 4  ;;  %s1054_s10 = int_to_ptr.vmem [resolvable:$false] %s1053_s10 }
  0x1a   : > { %v266_v5 = vld [vmem:[%s251_s15] sm:$0xff]  ;;  %v267_v7 = vld [vmem:[%s251_s15 + $0x8] sm:$0xff]  ;;  %v268_v8 = vld [vmem:[%s251_s15 + $0x10] sm:$0xff]  ;;  %s1055_s11 = scalar_lea.vmem %s1054_s10, 1024 }
  0x1b   : > { %v949_v9 = vcombine.high %v266_v5, %v266_v5  ;;  %v951_v10 = vcombine.high %v267_v7, %v267_v7  ;;  %v948_v11 = vcombine.low %v266_v5, %v266_v5  ;;  %v950_v12 = vcombine.low %v267_v7, %v267_v7  ;;  %v269_v13 = vld [vmem:[%s251_s15 + $0x18] sm:$0xff]  ;;  %s240_s15 = sand.u32 1, %s1111_s19  }
  0x1c   : > { %v952_v14 = vcombine.low %v268_v8, %v268_v8  ;;  %v953_v15 = vcombine.high %v268_v8, %v268_v8  ;;  %v954_v16 = vcombine.low %v269_v13, %v269_v13  ;;  %v955_v17 = vcombine.high %v269_v13, %v269_v13  ;;  %v1047_v8 = vld [vmem:[%s1375_s3] sm:$0xff]   ;;  %s944_s16 = sshll.u32 %s240_s15, 5  ;;  %s1326_s8 = scalar_lea.sflag [#allocation3], %s240_s15 }
  0x1d   : > { %v317_v18 = vand.u32 %v949_v9, %v312_v6  ;;  %v323_v19 = vand.u32 %v951_v10, %v312_v6  ;;  %v314_v20 = vand.u32 %v948_v11, %v312_v6  ;;  %v320_v21 = vand.u32 %v950_v12, %v312_v6  ;;  %s242_s17 = scalar_lea.vmem [#allocation2], %s944_s16 }
  0x1e   : > { %v329_v22 = vand.u32 %v953_v15, %v312_v6  ;;  %v335_v23 = vand.u32 %v955_v17, %v312_v6  ;;  %v326_v26 = vand.u32 %v952_v14, %v312_v6  ;;  %v332_v27 = vand.u32 %v954_v16, %v312_v6  ;;  %s861_s24 = sshll.u32 %s242_s17, 4  ;;  %s1317_s24 = int_to_ptr.vmem [resolvable:$true] %s861_s24 }
  0x1f   : > { %337 = vmatprep.subr.bf16.mxu0 %v317_v18  ;;  %380 = vmatprep.subr.bf16.mxu1 %v323_v19  ;;  %s1049_s21 = scalar_lea.vmem %s1317_s24, 512  ;;  %p1056_p1 = scmp.lt.s32.totalorder %s1317_s24, %s1054_s10 }
  0x20   : > { %338 = vmatpush1.bf16.msra.mxu0 %v314_v20  ;;  %381 = vmatpush1.bf16.msra.mxu1 %v320_v21  ;;  %p1050_p12 = scmp.ne.s32.totalorder %s1317_s24, %s1049_s21  ;;  %p1057_p2 = scmp.lt.s32.totalorder %s1055_s11, %s1049_s21 }
  0x21   : > { %423 = vmatprep.subr.bf16.mxu0 %v329_v22  ;;  %466 = vmatprep.subr.bf16.mxu1 %v335_v23 }
  0x22   : > { %p1051_p13 = pnand %p1050_p12, %p1204_p4  ;;  %p1058_p3 = por %p1057_p2, %p1056_p1 }
  0x23   : > { %956 = vmatmul.mubr.msk.bf16.vlgmr.msra.gmra.mrb[0].mxu0 %vm305_vm2, %v1042_v24  ;;  %957 = vmatmul.mubr.msk.bf16.vlgmr.msra.gmra.mrb[0].mxu1 %vm305_vm2, %v1042_v24 }
  0x24   : > { %424 = vmatpush1.bf16.msra.mxu0 %v326_v26  ;;  %467 = vmatpush1.bf16.msra.mxu1 %v332_v27  ;;  %v1048_v27 = vld [vmem:[%s1375_s3 + $0x8] sm:$0xff]   ;;  %p1052_p0 = pneg %p1051_p13 }
  0x25   : > { %455 = vmatprep.mubr.bf16.mxu0 %v1129_v0  ;;  %498 = vmatprep.mubr.bf16.mxu1 %v1129_v0 }
  0x26   : > { %p1059_p5 = pnand %p1058_p3, %p1052_p0 }
  0x2b   : > { %958 = vmatmul.mubr.msk.bf16.vlgmr.msra.gmra.mrb[4].mxu0 %vm305_vm2, %v1042_v24  ;;  %959 = vmatmul.mubr.msk.bf16.vlgmr.msra.gmra.mrb[4].mxu1 %vm305_vm2, %v1042_v24 }
  0x2c   : > { %602 = vmatprep.mubr.bf16.mxu0 %v1129_v0  ;;  %655 = vmatprep.mubr.bf16.mxu1 %v1129_v0 }
  0x90   : > { %v273_v31 = vpop.permute.xlu0 %272  ;;  %v1273_v28 = vpop.permute.xlu1 %535 }
  0x94   : > { %v278_v32 = vpop.permute.xlu0 %277  ;;  %v1275_v29 = vpop.permute.xlu1 %540 }
  0xf6   : > { %v371_v33 = vpop.f32.mrb[0].mxu0  ;;  %v414_v34 = vpop.f32.mrb[0].mxu1 }
  0xf7   : > { %v372_v35 = vadd.f32 %v371_v33, %v273_v31  ;;  %v415_v36 = vadd.f32 %v414_v34, %v273_v31  ;;  %v373_v37 = vpop.f32.mrb[1].mxu0  ;;  %v416_v38 = vpop.f32.mrb[1].mxu1 }
  0xf8   : > { %v374_v39 = vadd.f32 %v373_v37, %v273_v31  ;;  %v417_v40 = vadd.f32 %v416_v38, %v273_v31  ;;  %v375_v41 = vpop.f32.mrb[2].mxu0  ;;  %v418_v42 = vpop.f32.mrb[2].mxu1 }
  0xf9   : > { %v376_v43 = vadd.f32 %v375_v41, %v278_v32  ;;  %v419_v44 = vadd.f32 %v418_v42, %v278_v32  ;;  %v377_v45 = vpop.f32.mrb[3].mxu0  ;;  %v420_v46 = vpop.f32.mrb[3].mxu1  ;;  %v509_v49 = vmax.f32 %v372_v35, 0.0  ;;  %v511_v50 = vmax.f32 %v415_v36, 0.0 }
  0xfa   : > { %v378_v47 = vadd.f32 %v377_v45, %v278_v32  ;;  %v421_v48 = vadd.f32 %v420_v46, %v278_v32  ;;  %v510_v53 = vmax.f32 %v374_v39, 0.0  ;;  %v512_v54 = vmax.f32 %v417_v40, 0.0 }
  0xfb   : > { %v517_v51 = vmax.f32 %v376_v43, 0.0  ;;  %v519_v52 = vmax.f32 %v419_v44, 0.0 }
  0xfc   : > { %v518_v55 = vmax.f32 %v378_v47, 0.0  ;;  %v520_v56 = vmax.f32 %v421_v48, 0.0 }
  0xfd   : > { %v525_v57 = vpack.c.bf16 %v517_v51, %v509_v49  ;;  %v527_v58 = vpack.c.bf16 %v519_v52, %v511_v50 }
  0xfe   : > { %v526_v59 = vpack.c.bf16 %v518_v55, %v510_v53  ;;  %v528_v60 = vpack.c.bf16 %v520_v56, %v512_v54  ;;  %v457_v61 = vpop.f32.mrb[4].mxu0  ;;  %v500_v62 = vpop.f32.mrb[4].mxu1 }
  0xff   : > { %v458_v63 = vadd.f32 %v457_v61, %v273_v31  ;;  %v501_v1 = vadd.f32 %v500_v62, %v273_v31  ;;  %v459_v2 = vpop.f32.mrb[5].mxu0  ;;  %v502_v3 = vpop.f32.mrb[5].mxu1 }
 0x100   : > { %v460_v4 = vadd.f32 %v459_v2, %v273_v31  ;;  %v503_v5 = vadd.f32 %v502_v3, %v273_v31  ;;  %v461_v6 = vpop.f32.mrb[6].mxu0  ;;  %v504_v7 = vpop.f32.mrb[6].mxu1  ;;  %570 = vmatprep.subr.bf16.mxu0 %v526_v59  ;;  %623 = vmatprep.subr.bf16.mxu1 %v528_v60 }
 0x101   : > { %v462_v9 = vadd.f32 %v461_v6, %v278_v32  ;;  %v505_v10 = vadd.f32 %v504_v7, %v278_v32  ;;  %v463_v11 = vpop.f32.mrb[7].mxu0  ;;  %v506_v12 = vpop.f32.mrb[7].mxu1  ;;  %571 = vmatpush1.bf16.msra.mxu0 %v525_v57  ;;  %624 = vmatpush1.bf16.msra.mxu1 %v527_v58  ;;  %v513_v15 = vmax.f32 %v458_v63, 0.0  ;;  %v515_v16 = vmax.f32 %v501_v1, 0.0 }
 0x102   : > { %v464_v13 = vadd.f32 %v463_v11, %v278_v32  ;;  %v507_v14 = vadd.f32 %v506_v12, %v278_v32  ;;  %v514_v19 = vmax.f32 %v460_v4, 0.0  ;;  %v516_v20 = vmax.f32 %v503_v5, 0.0  ;;  %v1285_v53 = vpop.permute.xlu0 %545  ;;  %v1287_v54 = vpop.permute.xlu1 %550 }
 0x103   : > { %v521_v17 = vmax.f32 %v462_v9, 0.0  ;;  %v523_v18 = vmax.f32 %v505_v10, 0.0 }
 0x104   : > { %v522_v21 = vmax.f32 %v464_v13, 0.0  ;;  %v524_v22 = vmax.f32 %v507_v14, 0.0  ;;  %962 = vmatmul.mubr.msk.bf16.vlgmr.msra.gmra.mrb[8].mxu0 %vm563_vm3, %v1047_v8  ;;  %964 = vmatmul.mubr.msk.bf16.vlgmr.msra.gmra.mrb[8].mxu1 %vm563_vm3, %v1047_v8 }
 0x105   : > { %v529_v23 = vpack.c.bf16 %v521_v17, %v513_v15  ;;  %v531_v24 = vpack.c.bf16 %v523_v18, %v515_v16  ;;  %612 = vmatprep.mubr.bf16.mxu0 %v1129_v0  ;;  %665 = vmatprep.mubr.bf16.mxu1 %v1129_v0 }
 0x106   : > { %v530_v25 = vpack.c.bf16 %v522_v21, %v514_v19  ;;  %v532_v26 = vpack.c.bf16 %v524_v22, %v516_v20 }
 0x108   : > { %676 = vmatprep.subr.bf16.mxu0 %v530_v25  ;;  %729 = vmatprep.subr.bf16.mxu1 %v532_v26 }
 0x109   : > { %677 = vmatpush1.bf16.msra.mxu0 %v529_v23  ;;  %730 = vmatpush1.bf16.msra.mxu1 %v531_v24 }
 0x10c   : > { %963 = vmatmul.mubr.msk.bf16.gmra.mrb[12].mxu0 %vm563_vm3, %v1048_v27  ;;  %965 = vmatmul.mubr.msk.bf16.gmra.mrb[12].mxu1 %vm563_vm3, %v1048_v27 }
 0x10d   : > { %708 = vmatprep.mubr.bf16.mxu0 %v1129_v0  ;;  %761 = vmatprep.mubr.bf16.mxu1 %v1129_v0 }
 0x114   : > { %966 = vmatmul.mubr.msk.bf16.vlgmr.msra.gmra.mrb[16].mxu0 %vm563_vm3, %v1047_v8  ;;  %968 = vmatmul.mubr.msk.bf16.vlgmr.msra.gmra.mrb[16].mxu1 %vm563_vm3, %v1047_v8 }
 0x115   : > { %718 = vmatprep.mubr.bf16.mxu0 %v1129_v0  ;;  %771 = vmatprep.mubr.bf16.mxu1 %v1129_v0 }
 0x11c   : > { %967 = vmatmul.mubr.msk.bf16.gmra.mrb[20].mxu0 %vm563_vm3, %v1048_v27  ;;  %969 = vmatmul.mubr.msk.bf16.gmra.mrb[20].mxu1 %vm563_vm3, %v1048_v27 }
 0x1d7   : > { %v604_v30 = vpop.f32.mrb[8].mxu0  ;;  %v657_v31 = vpop.f32.mrb[8].mxu1 }
 0x1d8   : > { %v605_v32 = vadd.f32 %v604_v30, %v1273_v28  ;;  %v606_v33 = vpop.f32.mrb[9].mxu0  ;;  %v658_v34 = vadd.f32 %v657_v31, %v1273_v28  ;;  %v659_v35 = vpop.f32.mrb[9].mxu1 }
 0x1d9   : > { %v607_v36 = vadd.f32 %v606_v33, %v1273_v28  ;;  %v608_v37 = vpop.f32.mrb[10].mxu0  ;;  %v660_v0 = vadd.f32 %v659_v35, %v1273_v28  ;;  %v661_v38 = vpop.f32.mrb[10].mxu1 }
 0x1da   : > { %v782_v39 = vmax.f32 %v605_v32, 0.0  ;;  %v609_v40 = vadd.f32 %v608_v37, %v1275_v29  ;;  %v610_v41 = vpop.f32.mrb[11].mxu0  ;;  %v662_v42 = vadd.f32 %v661_v38, %v1275_v29  ;;  %v663_v43 = vpop.f32.mrb[11].mxu1  ;;  %v784_v45 = vmax.f32 %v658_v34, 0.0 }
 0x1db   : > { %v783_v44 = vmax.f32 %v607_v36, 0.0  ;;  %v611_v46 = vadd.f32 %v610_v41, %v1275_v29  ;;  %v785_v48 = vmax.f32 %v660_v0, 0.0  ;;  %v664_v52 = vadd.f32 %v663_v43, %v1275_v29 }
 0x1dc   : > { %v790_v47 = vmax.f32 %v609_v40, 0.0  ;;  %v792_v51 = vmax.f32 %v662_v42, 0.0 }
 0x1dd   : > { %v814_v49 = vmax.f32 %v782_v39, %v783_v44  ;;  %v791_v50 = vmax.f32 %v611_v46, 0.0  ;;  %v793_v2 = vmax.f32 %v664_v52, 0.0 }
 0x1df   : > { %v818_v55 = vmax.f32 %v814_v49, %v784_v45  ;;  %v815_v56 = vmax.f32 %v790_v47, %v791_v50  ;;  %v614_v57 = vpop.f32.mrb[12].mxu0  ;;  %v667_v58 = vpop.f32.mrb[12].mxu1 }
 0x1e0   : > { %v615_v59 = vadd.f32 %v614_v57, %v1285_v53  ;;  %v668_v60 = vadd.f32 %v667_v58, %v1285_v53  ;;  %v616_v61 = vpop.f32.mrb[13].mxu0  ;;  %v669_v62 = vpop.f32.mrb[13].mxu1 }
 0x1e1   : > { %v822_v63 = vmax.f32 %v818_v55, %v785_v48  ;;  %v819_v1 = vmax.f32 %v815_v56, %v792_v51  ;;  %v617_v3 = vadd.f32 %v616_v61, %v1285_v53  ;;  %v618_v4 = vpop.f32.mrb[14].mxu0  ;;  %v671_v5 = vpop.f32.mrb[14].mxu1  ;;  %v670_v13 = vadd.f32 %v669_v62, %v1285_v53 }
 0x1e2   : > { %v798_v6 = vmax.f32 %v615_v59, 0.0  ;;  %v619_v7 = vadd.f32 %v618_v4, %v1287_v54  ;;  %v620_v8 = vpop.f32.mrb[15].mxu0  ;;  %v672_v9 = vadd.f32 %v671_v5, %v1287_v54  ;;  %v673_v10 = vpop.f32.mrb[15].mxu1  ;;  %v800_v15 = vmax.f32 %v668_v60, 0.0 }
 0x1e3   : > { %v823_v11 = vmax.f32 %v819_v1, %v793_v2  ;;  %v799_v12 = vmax.f32 %v617_v3, 0.0  ;;  %v621_v14 = vadd.f32 %v620_v8, %v1287_v54  ;;  %v674_v20 = vadd.f32 %v673_v10, %v1287_v54 }
 0x1e4   : > { %v806_v16 = vmax.f32 %v619_v7, 0.0  ;;  %v808_v19 = vmax.f32 %v672_v9, 0.0  ;;  %v801_v21 = vmax.f32 %v670_v13, 0.0 }
 0x1e5   : > { %v816_v17 = vmax.f32 %v798_v6, %v799_v12  ;;  %v807_v18 = vmax.f32 %v621_v14, 0.0  ;;  %v809_v33 = vmax.f32 %v674_v20, 0.0 }
 0x1e7   : > { %v820_v22 = vmax.f32 %v816_v17, %v800_v15  ;;  %v817_v23 = vmax.f32 %v806_v16, %v807_v18  ;;  %v710_v24 = vpop.f32.mrb[16].mxu0  ;;  %v763_v25 = vpop.f32.mrb[16].mxu1 }
 0x1e8   : > { %v711_v26 = vadd.f32 %v710_v24, %v1273_v28  ;;  %v712_v27 = vpop.f32.mrb[17].mxu0  ;;  %v765_v30 = vpop.f32.mrb[17].mxu1  ;;  %v764_v0 = vadd.f32 %v763_v25, %v1273_v28 }
 0x1e9   : > { %v824_v31 = vmax.f32 %v820_v22, %v801_v21  ;;  %v821_v32 = vmax.f32 %v817_v23, %v808_v19  ;;  %v713_v34 = vadd.f32 %v712_v27, %v1273_v28  ;;  %v714_v35 = vpop.f32.mrb[18].mxu0  ;;  %v767_v36 = vpop.f32.mrb[18].mxu1  ;;  %v766_v43 = vadd.f32 %v765_v30, %v1273_v28 }
 0x1ea   : > { %v786_v37 = vmax.f32 %v711_v26, 0.0  ;;  %v715_v38 = vadd.f32 %v714_v35, %v1275_v29  ;;  %v716_v39 = vpop.f32.mrb[19].mxu0  ;;  %v769_v40 = vpop.f32.mrb[19].mxu1  ;;  %v768_v47 = vadd.f32 %v767_v36, %v1275_v29  ;;  %v788_v50 = vmax.f32 %v764_v0, 0.0 }
 0x1eb   : > { %v825_v41 = vmax.f32 %v821_v32, %v809_v33  ;;  %v787_v42 = vmax.f32 %v713_v34, 0.0  ;;  %v717_v44 = vadd.f32 %v716_v39, %v1275_v29  ;;  %v770_v49 = vadd.f32 %v769_v40, %v1275_v29 }
 0x1ec   : > { %v826_v45 = vmax.f32 %v822_v63, %v786_v37  ;;  %v794_v46 = vmax.f32 %v715_v38, 0.0  ;;  %v789_v55 = vmax.f32 %v766_v43, 0.0  ;;  %v796_v59 = vmax.f32 %v768_v47, 0.0 }
 0x1ed   : > { %v795_v48 = vmax.f32 %v717_v44, 0.0  ;;  %v797_v63 = vmax.f32 %v770_v49, 0.0 }
 0x1ee   : > { %v830_v51 = vmax.f32 %v826_v45, %v787_v42  ;;  %v827_v52 = vmax.f32 %v823_v11, %v794_v46 }
 0x1ef   : > { %v720_v56 = vpop.f32.mrb[20].mxu0  ;;  %v773_v57 = vpop.f32.mrb[20].mxu1 }
 0x1f0   : > { %v834_v58 = vmax.f32 %v830_v51, %v788_v50  ;;  %v831_v28 = vmax.f32 %v827_v52, %v795_v48  ;;  %v721_v60 = vadd.f32 %v720_v56, %v1285_v53  ;;  %v722_v61 = vpop.f32.mrb[21].mxu0  ;;  %v775_v62 = vpop.f32.mrb[21].mxu1  ;;  %v774_v6 = vadd.f32 %v773_v57, %v1285_v53 }
 0x1f1   : > { %v723_v1 = vadd.f32 %v722_v61, %v1285_v53  ;;  %v724_v2 = vpop.f32.mrb[22].mxu0  ;;  %v777_v29 = vpop.f32.mrb[22].mxu1  ;;  %v776_v13 = vadd.f32 %v775_v62, %v1285_v53 }
 0x1f2   : > { %v838_v3 = vmax.f32 %v834_v58, %v789_v55  ;;  %v835_v4 = vmax.f32 %v831_v28, %v796_v59  ;;  %v802_v5 = vmax.f32 %v721_v60, 0.0  ;;  %v726_v7 = vpop.f32.mrb[23].mxu0  ;;  %v779_v8 = vpop.f32.mrb[23].mxu1  ;;  %v725_v10 = vadd.f32 %v724_v2, %v1287_v54 }
 0x1f3   : > { %v803_v9 = vmax.f32 %v723_v1, 0.0  ;;  %v727_v14 = vadd.f32 %v726_v7, %v1287_v54  ;;  %v778_v16 = vadd.f32 %v777_v29, %v1287_v54  ;;  %v804_v17 = vmax.f32 %v774_v6, 0.0 }
 0x1f4   : > { %842 = vst [vmem:[%s242_s17] sm:$0xff] %v838_v3  ;;  %v839_v11 = vmax.f32 %v835_v4, %v797_v63  ;;  %v828_v12 = vmax.f32 %v824_v31, %v802_v5  ;;  %v810_v15 = vmax.f32 %v725_v10, 0.0  ;;  %v780_v21 = vadd.f32 %v779_v8, %v1287_v54 }
 0x1f5   : > { %v811_v19 = vmax.f32 %v727_v14, 0.0  ;;  %v805_v22 = vmax.f32 %v776_v13, 0.0  ;;  %v812_v24 = vmax.f32 %v778_v16, 0.0 }
 0x1f6   : > { %843 = vst [vmem:[%s242_s17 + $0x8] sm:$0xff] %v839_v11  ;;  %v832_v18 = vmax.f32 %v828_v12, %v803_v9  ;;  %v829_v20 = vmax.f32 %v825_v41, %v810_v15  ;;  %v813_v26 = vmax.f32 %v780_v21, 0.0 }
 0x1f8   : > { %v836_v23 = vmax.f32 %v832_v18, %v804_v17  ;;  %v833_v25 = vmax.f32 %v829_v20, %v811_v19 }
 0x1fa   : > { %v840_v53 = vmax.f32 %v836_v23, %v805_v22  ;;  %v837_v27 = vmax.f32 %v833_v25, %v812_v24 }
 0x1fc   : > { %844 = vst [vmem:[%s242_s17 + $0x10] sm:$0xff] %v840_v53  ;;  %v841_v54 = vmax.f32 %v837_v27, %v813_v26 }
 0x1fe   : > { %845 = vst [vmem:[%s242_s17 + $0x18] sm:$0xff] %v841_v54 }
 0x1ff   : > { %1062 = shalt.err (!%p1059_p5)
}
 0x200   : > { %s1063_s12 = scalar_lea.hbm %s1322_s7, 512  ;;  %s1067_s15 = scalar_lea.hbm %s1377_s5, 1024 }
 0x201   : > { %p1064_p6 = scmp.ne.s32.totalorder %s1322_s7, %s1063_s12  ;;  %p1068_p10 = scmp.lt.u32.totalorder %s1322_s7, %s1377_s5 }
 0x202   : > { %p1069_p11 = scmp.lt.u32.totalorder %s1067_s15, %s1063_s12  ;;  %p1071_p13 = scmp.lt.u32.totalorder %s1063_s12, %s1322_s7 }
 0x203   : > { %p1065_p7 = pnand %p1064_p6, %p1204_p4 }
 0x204   : > { %p1070_p12 = por %p1069_p11, %p1068_p10 }
 0x205   : > { %p1066_p9 = pneg %p1065_p7 }
 0x206   : > { %p1072_p0 = por %p1071_p13, %p1070_p12 }
 0x208   : > { %p1073_p1 = pnand %p1072_p0, %p1066_p9 }
 0x20a   : > { %1076 = shalt.err (!%p1073_p1)
}
 0x20b   : > { %s1132_s25 = smov 128   ;;  %s1133_s27 = smov 8  }
 0x20c   : > { %977 = dma.vmem_to_hbm [thread:$0]  (%p1204_p4), %s1317_s24, 512, %s1322_s7, %s1326_s8, %s1132_s25, %s1132_s25, %s1133_s27  }
 0x20d PF: > { %p983_p2 = scmp.ge.s32.totalorder %s1127_s23, 2  ;;  %s876_s29 = sand.u32 1, %s1107_s18  }
 0x20e   : > { %s877_s21 = scalar_lea.sflag [#allocation3], %s876_s29 }
 0x20f   : > { %p980_p3 = pnand %p983_p2, %p1211_p8 }
 0x211   : > { %1102 = dma.done.wait (!%p980_p3), %s877_s21, 512  }
 0x212   : > { %1104 = vsyncadd (!%p980_p3), %s877_s21, 4294966784  ;;  %s18_s23 = sadd.s32 1, %s1127_s23   ;;  %s1380_s18 = smov %s1111_s19 }
 0x213   : > { %p15_p5 = scmp.ge.s32.totalorder %s18_s23, 4   ;;  %s1381_s19 = smov %s1115_s20 }
 0x214   : > { %s1382_s20 = smov %s1217_s6  ;;  %s1383_s21 = smov %s1123_s22 }
 0x215   : > { %s1384_s22 = smov %s1386_s26  ;;  %17 = sbr.rel (!%p15_p5) target bundleno = 4 (0x4), region = 75 }
 0x21c   :  { %882 = vsyncpa [#allocation3], 1 }
 0x21d   :  { %884 = vsyncpa [#allocation3 + $0x1], 1 }

</bundles_post_ra>
